<compile_context>
chip_gen: v7x
topology: tpu7x:2x2x1
jax: 0.10.0
libtpu: 0.0.40
codegen_flags: <defaults>
</compile_context>

<pallas_src>
import functools

import jax
import jax.numpy as jnp
from jax.experimental import pallas as pl
from jax.experimental.pallas import tpu as pltpu


def _raloss_kernel(labels_ref, x_ref, centers_ref, out_ref, acc_ref, *, batch):
    # labels_ref : (TB, 1)  int32          VMEM
    # x_ref      : (TB, D)  f32/bf16       VMEM (streamed over the B grid)
    # centers_ref: (C, D)   f32/bf16       VMEM (replicated every grid step)
    # out_ref    : (1,)     f32            SMEM
    # acc_ref    : (1,)     f32            SMEM scratch (running clamped sum)
    pid = pl.program_id(0)
    TB, D = x_ref.shape
    C = centers_ref.shape[0]

    @pl.when(pid == 0)
    def _():
        acc_ref[0] = jnp.float32(0.0)

    x = x_ref[...].astype(jnp.float32)              # (TB, D)
    centers = centers_ref[...].astype(jnp.float32)  # (C, D)

    # ---- one-hot select of each row's own center on the MXU ----
    class_ids = jax.lax.broadcasted_iota(jnp.int32, (TB, C), 1)
    one_hot = (labels_ref[...] == class_ids).astype(jnp.float32)      # (TB, C)
    sel = jnp.dot(one_hot, centers, preferred_element_type=jnp.float32)  # (TB, D)

    # ---- per-row squared distance (same expansion as the reference) ----
    x_sq = jnp.sum(x * x, axis=1, keepdims=True)        # (TB, 1)
    c_sq = jnp.sum(sel * sel, axis=1, keepdims=True)    # (TB, 1)
    xc = jnp.sum(x * sel, axis=1, keepdims=True)        # (TB, 1)
    d = x_sq + c_sq - 2.0 * xc                          # (TB, 1)

    # ---- sum over features of unbiased variance of centers over classes ----
    mean_c = jnp.sum(centers, axis=0, keepdims=True) * jnp.float32(1.0 / C)
    cdiff = centers - mean_c                            # (C, D)
    per_feat_ss = jnp.sum(cdiff * cdiff, axis=0, keepdims=True)        # (1, D)
    var_sum = jnp.sum(per_feat_ss, axis=1, keepdims=True) * jnp.float32(
        1.0 / (C - 1))                                                 # (1, 1)

    # ---- scale, clamp, mask padded rows, accumulate ----
    inv_var = pl.reciprocal(var_sum, approx=False)      # (1, 1)
    d_clamped = jnp.clip(d * inv_var, 1e-12, 1.0e12)    # (TB, 1)

    row_ids = pid * TB + jax.lax.broadcasted_iota(jnp.int32, (TB, 1), 0)
    partial = jnp.sum(jnp.where(row_ids < batch, d_clamped, 0.0))

    acc_ref[0] += partial

    # Analytic contribution of the B*(C-1) masked-out zeros (clamp -> 1e-12).
    zero_terms = jnp.float32(batch * (C - 1) * 1e-12)
    out_ref[0] = (acc_ref[0] + zero_terms) * jnp.float32(1.0 / batch)


def raloss_pallas(x, centers, labels, *, block_rows=512):
    """x: (B, D), centers: (C, D), labels: (B,) int -> scalar f32 loss."""
    B, D = x.shape
    C, _ = centers.shape

    # Row tile: multiple of 8 sublanes, capped so (TB*D) tiles double-buffer
    # comfortably inside the scoped VMEM budget on every TPU generation.
    tb = min(block_rows, ((B + 7) // 8) * 8)
    tb = max(8, ((tb + 7) // 8) * 8)
    nb = pl.cdiv(B, tb)
    b_pad = nb * tb

    labels2d = labels.astype(jnp.int32).reshape(B, 1)
    if b_pad != B:
        x = jnp.pad(x, ((0, b_pad - B), (0, 0)))
        labels2d = jnp.pad(labels2d, ((0, b_pad - B), (0, 0)))

    kernel = functools.partial(_raloss_kernel, batch=B)

    flops = 2 * b_pad * C * D + 8 * b_pad * D + 4 * C * D
    bytes_accessed = (x.size * x.dtype.itemsize
                      + centers.size * centers.dtype.itemsize
                      + labels2d.size * 4 + 4)

    out = pl.pallas_call(
        kernel,
        out_shape=jax.ShapeDtypeStruct((1,), jnp.float32),
        grid=(nb,),
        in_specs=[
            pl.BlockSpec((tb, 1), lambda i: (i, 0)),   # labels (lane-dense ids)
            pl.BlockSpec((tb, D), lambda i: (i, 0)),   # x, streamed over B
            pl.BlockSpec((C, D), lambda i: (0, 0)),    # centers, replicated
        ],
        out_specs=pl.BlockSpec((1,), lambda i: (0,), memory_space=pltpu.SMEM),
        scratch_shapes=[pltpu.SMEM((1,), jnp.float32)],
        compiler_params=pltpu.CompilerParams(
            dimension_semantics=("arbitrary",),
            allow_input_fusion=[True, True, True],
        ),
        cost_estimate=pl.CostEstimate(
            flops=flops, transcendentals=0, bytes_accessed=bytes_accessed),
    )(labels2d, x, centers)
    return out[0]


def raloss_ref(x, centers, labels):
    """Pure-JAX reference mirroring the PyTorch forward (expansion + mask)."""
    B = x.shape[0]
    C = centers.shape[0]
    distmat = (
        jnp.sum(x**2, axis=1, keepdims=True)
        + jnp.sum(centers**2, axis=1)[None, :]
        - 2.0 * x @ centers.T
    )
    mask = (labels[:, None] == jnp.arange(C)[None, :]).astype(jnp.float32)
    var_sum = jnp.sum(jnp.var(centers, axis=0, ddof=1))
    dist = distmat * mask / var_sum
    return jnp.sum(jnp.clip(dist, 1e-12, 1.0e12)) / B


if __name__ == "__main__":
    num_class = 7
    feat_dim = 128
    batch = 8

    key = jax.random.PRNGKey(0)
    k_x, k_c, k_l = jax.random.split(key, 3)

    # deterministic stand-ins for torch.randn parameter / features
    centers = jax.random.normal(k_c, (num_class, feat_dim), dtype=jnp.float32)
    x = jax.random.normal(k_x, (batch, feat_dim), dtype=jnp.float32)
    labels = jax.random.randint(k_l, (batch,), 0, num_class, dtype=jnp.int32)

    loss = jax.block_until_ready(raloss_pallas(x, centers, labels))
    loss_ref = jax.block_until_ready(raloss_ref(x, centers, labels))

    assert jnp.allclose(loss, loss_ref, rtol=1e-5, atol=1e-5), (loss, loss_ref)
    print("KERNEL_OK")
</pallas_src>

<mosaic_0001>
module attributes {stable_mosaic.version = 11 : i64} {
  func.func @_raloss_kernel(%arg0: i32, %arg1: memref<8x1xi32, #tpu.memory_space<vmem>>, %arg2: memref<8x128xf32, #tpu.memory_space<vmem>>, %arg3: memref<7x128xf32, #tpu.memory_space<vmem>>, %arg4: memref<1xf32, #tpu.memory_space<smem>>, %arg5: memref<1xf32, #tpu.memory_space<smem>>) attributes {dimension_semantics = [#tpu.dimension_semantics<arbitrary>], iteration_bounds = array<i64: 1>, scalar_prefetch = 0 : i64, scratch_operands = 1 : i64, tpu.core_type = #tpu.core_type<tc>, window_params = [{transform_indices = @transform_0, window_bounds = array<i64: 8, 1>}, {transform_indices = @transform_1, window_bounds = array<i64: 8, 128>}, {pipeline_mode = #tpu.pipeline_mode<synchronous>, transform_indices = @transform_2, window_bounds = array<i64: 7, 128>}, {transform_indices = @transform_3, window_bounds = array<i64: 1>}]} {
    %c0_i32 = arith.constant 0 : i32
    %0 = arith.cmpi eq, %arg0, %c0_i32 : i32
    %1 = arith.extui %0 : i1 to i32
    %c0_i32_0 = arith.constant 0 : i32
    %2 = arith.cmpi ne, %1, %c0_i32_0 : i32
    scf.if %2 {
      %cst_26 = arith.constant 0.000000e+00 : f32
      %c0_27 = arith.constant 0 : index
      %64 = memref.load %arg5[%c0_27] : memref<1xf32, #tpu.memory_space<smem>>
      memref.store %cst_26, %arg5[%c0_27] : memref<1xf32, #tpu.memory_space<smem>>
    } else {
    }
    %c0 = arith.constant 0 : index
    %c0_1 = arith.constant 0 : index
    %3 = vector.load %arg2[%c0, %c0_1] : memref<8x128xf32, #tpu.memory_space<vmem>>, vector<8x128xf32>
    %c0_2 = arith.constant 0 : index
    %c0_3 = arith.constant 0 : index
    %4 = vector.load %arg3[%c0_2, %c0_3] : memref<7x128xf32, #tpu.memory_space<vmem>>, vector<7x128xf32>
    %5 = tpu.iota {dimensions = array<i32: 1>} : vector<8x7xi32>
    %c0_4 = arith.constant 0 : index
    %c0_5 = arith.constant 0 : index
    %6 = vector.load %arg1[%c0_4, %c0_5] : memref<8x1xi32, #tpu.memory_space<vmem>>, vector<8x1xi32>
    %7 = vector.broadcast %6 : vector<8x1xi32> to vector<8x7xi32>
    %8 = arith.cmpi eq, %7, %5 : vector<8x7xi32>
    %9 = arith.extui %8 : vector<8x7xi1> to vector<8x7xi32>
    %10 = arith.sitofp %9 : vector<8x7xi32> to vector<8x7xf32>
    %cst = arith.constant dense<0.000000e+00> : vector<8x128xf32>
    %11 = tpu.matmul %10, %4, %cst {dimension_numbers = #tpu.dot_dimension_numbers<[1], [0], [0], [1], [0, 0, 1, 1], [], []>} : vector<8x7xf32>, vector<7x128xf32>, vector<8x128xf32> -> vector<8x128xf32>
    %12 = arith.mulf %3, %3 : vector<8x128xf32>
    %cst_6 = arith.constant dense<0.000000e+00> : vector<8xf32>
    %13 = vector.multi_reduction <add>, %12, %cst_6 [1] : vector<8x128xf32> to vector<8xf32>
    %14 = vector.shape_cast %13 : vector<8xf32> to vector<8x1xf32>
    %15 = arith.mulf %11, %11 : vector<8x128xf32>
    %cst_7 = arith.constant dense<0.000000e+00> : vector<8xf32>
    %16 = vector.multi_reduction <add>, %15, %cst_7 [1] : vector<8x128xf32> to vector<8xf32>
    %17 = vector.shape_cast %16 : vector<8xf32> to vector<8x1xf32>
    %18 = arith.mulf %3, %11 : vector<8x128xf32>
    %cst_8 = arith.constant dense<0.000000e+00> : vector<8xf32>
    %19 = vector.multi_reduction <add>, %18, %cst_8 [1] : vector<8x128xf32> to vector<8xf32>
    %20 = vector.shape_cast %19 : vector<8xf32> to vector<8x1xf32>
    %21 = arith.addf %14, %17 : vector<8x1xf32>
    %cst_9 = arith.constant 2.000000e+00 : f32
    %22 = vector.broadcast %cst_9 : f32 to vector<8x1xf32>
    %23 = arith.mulf %22, %20 : vector<8x1xf32>
    %24 = arith.subf %21, %23 : vector<8x1xf32>
    %cst_10 = arith.constant dense<0.000000e+00> : vector<128xf32>
    %25 = vector.multi_reduction <add>, %4, %cst_10 [0] : vector<7x128xf32> to vector<128xf32>
    %26 = vector.shape_cast %25 : vector<128xf32> to vector<1x128xf32>
    %cst_11 = arith.constant 0.142857149 : f32
    %27 = vector.broadcast %cst_11 : f32 to vector<1x128xf32>
    %28 = arith.mulf %26, %27 : vector<1x128xf32>
    %29 = vector.broadcast %28 : vector<1x128xf32> to vector<7x128xf32>
    %30 = arith.subf %4, %29 : vector<7x128xf32>
    %31 = arith.mulf %30, %30 : vector<7x128xf32>
    %cst_12 = arith.constant dense<0.000000e+00> : vector<128xf32>
    %32 = vector.multi_reduction <add>, %31, %cst_12 [0] : vector<7x128xf32> to vector<128xf32>
    %33 = vector.shape_cast %32 : vector<128xf32> to vector<1x128xf32>
    %cst_13 = arith.constant dense<0.000000e+00> : vector<1xf32>
    %34 = vector.multi_reduction <add>, %33, %cst_13 [1] : vector<1x128xf32> to vector<1xf32>
    %35 = vector.shape_cast %34 : vector<1xf32> to vector<1x1xf32>
    %cst_14 = arith.constant 0.166666672 : f32
    %36 = vector.broadcast %cst_14 : f32 to vector<1x1xf32>
    %37 = arith.mulf %35, %36 : vector<1x1xf32>
    %38 = tpu.reciprocal %37 : vector<1x1xf32> -> vector<1x1xf32>
    %39 = vector.broadcast %38 : vector<1x1xf32> to vector<8x1xf32>
    %40 = arith.mulf %24, %39 : vector<8x1xf32>
    %cst_15 = arith.constant 9.99999996E-13 : f32
    %cst_16 = arith.constant 9.99999995E+11 : f32
    %41 = vector.broadcast %cst_15 : f32 to vector<8x1xf32>
    %42 = arith.maximumf %41, %40 : vector<8x1xf32>
    %43 = vector.broadcast %cst_16 : f32 to vector<8x1xf32>
    %44 = arith.minimumf %43, %42 : vector<8x1xf32>
    %c8_i32 = arith.constant 8 : i32
    %45 = arith.muli %arg0, %c8_i32 : i32
    %46 = tpu.iota {dimensions = array<i32: 0>} : vector<8x1xi32>
    %47 = vector.broadcast %45 : i32 to vector<8x1xi32>
    %48 = arith.addi %47, %46 : vector<8x1xi32>
    %c8_i32_17 = arith.constant 8 : i32
    %49 = vector.broadcast %c8_i32_17 : i32 to vector<8x1xi32>
    %50 = arith.cmpi slt, %48, %49 : vector<8x1xi32>
    %cst_18 = arith.constant 0.000000e+00 : f32
    %51 = vector.broadcast %cst_18 : f32 to vector<8x1xf32>
    %52 = arith.select %50, %44, %51 : vector<8x1xi1>, vector<8x1xf32>
    %53 = vector.shape_cast %52 : vector<8x1xf32> to vector<1x8x1xf32>
    %cst_19 = arith.constant dense<0.000000e+00> : vector<1xf32>
    %54 = vector.multi_reduction <add>, %53, %cst_19 [1, 2] : vector<1x8x1xf32> to vector<1xf32>
    %55 = vector.shape_cast %54 : vector<1xf32> to vector<1x1x1xf32>
    %56 = vector.extract %55[0, 0, 0] : f32 from vector<1x1x1xf32>
    %c0_20 = arith.constant 0 : index
    %57 = memref.load %arg5[%c0_20] : memref<1xf32, #tpu.memory_space<smem>>
    %58 = arith.addf %57, %56 : f32
    %c0_21 = arith.constant 0 : index
    %59 = memref.load %arg5[%c0_21] : memref<1xf32, #tpu.memory_space<smem>>
    memref.store %58, %arg5[%c0_21] : memref<1xf32, #tpu.memory_space<smem>>
    %c0_22 = arith.constant 0 : index
    %60 = memref.load %arg5[%c0_22] : memref<1xf32, #tpu.memory_space<smem>>
    %cst_23 = arith.constant 4.800000e-11 : f32
    %61 = arith.addf %60, %cst_23 : f32
    %cst_24 = arith.constant 1.250000e-01 : f32
    %62 = arith.mulf %61, %cst_24 : f32
    %c0_25 = arith.constant 0 : index
    %63 = memref.load %arg4[%c0_25] : memref<1xf32, #tpu.memory_space<smem>>
    memref.store %62, %arg4[%c0_25] : memref<1xf32, #tpu.memory_space<smem>>
    return
  }
  func.func @transform_0(%arg0: i32) -> (i32, i32) {
    %c0_i32 = arith.constant 0 : i32
    %c0_i32_0 = arith.constant 0 : i32
    return %arg0, %c0_i32 : i32, i32
  }
  func.func @transform_1(%arg0: i32) -> (i32, i32) {
    %c0_i32 = arith.constant 0 : i32
    %c0_i32_0 = arith.constant 0 : i32
    return %arg0, %c0_i32 : i32, i32
  }
  func.func @transform_2(%arg0: i32) -> (i32, i32) {
    %c0_i32 = arith.constant 0 : i32
    %c0_i32_0 = arith.constant 0 : i32
    %c0_i32_1 = arith.constant 0 : i32
    return %c0_i32, %c0_i32_0 : i32, i32
  }
  func.func @transform_3(%arg0: i32) -> i32 {
    %c0_i32 = arith.constant 0 : i32
    %c0_i32_0 = arith.constant 0 : i32
    return %c0_i32 : i32
  }
}

</mosaic_0001>

<bundles_post_ra>
// kernel: tpu_custom_call.1
= control target key start
LH: loop header
LB: loop body
LE: loop exit
PB: predicated region body
PF: predicated region fallthrough
CT: control target
= control target key end

     0   :  { %s265_s0 = inlined_call_operand.vmem [shape: s32[8,1], index: 0, kind: input, shape index: {}]   ;;  %s266_s1 = inlined_call_operand.vmem [shape: f32[8,128], index: 1, kind: input, shape index: {}]   ;;  %s267_s2 = inlined_call_operand.vmem [shape: f32[7,128], index: 2, kind: input, shape index: {}]   ;;  %s268_s3 = inlined_call_operand.hbm [shape: f32[1], index: 3, kind: output, shape index: {}]  }
   0x1   :  { %v25_v0 = vld [vmem:[%s265_s0] sm:$0xff] }
   0x2   :  { %8 = vsyncpa [#allocation4], 0  ;;  %v217_v1 = vmov 0   ;;  %v218_v2 = vmov 0.0   ;;  %v22_v3 = vld [vmem:[%s267_s2] sm:$0x7f]  ;;  %v23_v23 = vlaneseq }
   0x3   :  { %202 = vset.pattern.permute.xlu0 %v217_v1  ;;  %191 = vmatprep.subr.mxu0 %v218_v2  ;;  %vm36_vm0 = vcmask 1046528   ;;  %vm219_vm1 = vmmov 0   ;;  %v21_v6 = vld [vmem:[%s266_s1] sm:$0xff]  ;;  %vm32_vm2 = vcmask 56320   ;;  %vm153_vm4 = vcmask 7168   ;;  %s205_s20 = scalar_lea.hbm %s268_s3, 16 }
   0x4   :  { %27 = vperm.xlu0 %202, %v25_v0   ;;  %192 = vmatpush3.msk.msra.mxu0 %vm36_vm0, %v22_v3  ;;  %v122_v4 = vsel %vm36_vm0, %v22_v3, 0.0  ;;  %v110_v7 = vmul.f32 %v21_v6, %v21_v6  ;;  %v24_v24 = vand.u32 127, %v23_v23  ;;  %p206_p0 = scmp.ne.s32.totalorder %s268_s3, %s205_s20  ;;  %p209_p1 = scmp.lt.u32.totalorder %s205_s20, %s268_s3 }
   0x5   :  { %193 = vmatprep.mubr.msk.f32.mxu0 %vm219_vm1, %v218_v2  ;;  %v123_v5 = vrot.slane %v122_v4, 4 }
   0x6   :  { %111 = vadd.xlane.f32.xlu1 %v110_v7  ;;  %p211_p2 = pnand %p209_p1, %p206_p0 }
   0x7   :  { %v124_v8 = vadd.f32 %v123_v5, %v122_v4 }
   0x9   :  { %v125_v9 = vrot.slane %v124_v8, 2 }
   0xb   :  { %v126_v10 = vadd.f32 %v125_v9, %v124_v8 }
   0xd   :  { %v127_v11 = vrot.slane %v126_v10, 1 }
   0xf   :  { %v128_v12 = vadd.f32 %v127_v11, %v126_v10 }
  0x11   :  { %v129_v13 = vmul.f32 0.14285715, %v128_v12 }
  0x13   :  { %v130_v14 = vsub.f32 %v22_v3, %v129_v13 }
  0x15   :  { %v131_v15 = vmul.f32 %v130_v14, %v130_v14 }
  0x17   :  { %v132_v16 = vsel %vm36_vm0, %v131_v15, 0.0 }
  0x18   :  { %v133_v17 = vrot.slane %v132_v16, 4 }
  0x1a   :  { %v134_v18 = vadd.f32 %v133_v17, %v132_v16 }
  0x1c   :  { %v135_v19 = vrot.slane %v134_v18, 2 }
  0x1e   :  { %v136_v20 = vadd.f32 %v135_v19, %v134_v18 }
  0x20   :  { %v137_v21 = vrot.slane %v136_v20, 1 }
  0x22   :  { %v138_v22 = vadd.f32 %v137_v21, %v136_v20 }
  0x24   :  { %139 = vadd.xlane.f32.xlu0 %v138_v22 }
  0x83   :  { %v28_v25 = vpop.permute.xlu0 %27 }
  0x84   :  { %vm29_vm3 = vcmp.eq.s32.totalorder %v28_v25, %v24_v24 }
  0x85   :  { %v186_v26 = vsel %vm29_vm3, 1.0, %v218_v2 }
  0x86   :  { %194 = vmatmul.mubr.msk.f32.vlgmr.msra.gmra.mrb[0].mxu0 %vm32_vm2, %v186_v26 }
  0x93   :  { %v112_v33 = vpop.xlane.xlu1 %111 }
  0xb1   :  { %v140_v31 = vpop.xlane.xlu0 %139 }
  0xb2   :  { %v141_v32 = vmul.f32 0.16666667, %v140_v31 }
  0xb4   :  { %203 = vrcp.f32 %v141_v32 }
  0xbe   :  { %v204_v38 = vpop.eup %203 }
 0x159   :  { %v106_v27 = vpop.f32.mrb[0].mxu0 }
 0x15a   :  { %v195_v28 = vpop.f32.mrb[1].mxu0  ;;  %v113_v29 = vmul.f32 %v106_v27, %v106_v27  ;;  %v116_v30 = vmul.f32 %v106_v27, %v21_v6 }
 0x15c   :  { %114 = vadd.xlane.f32.xlu1 %v113_v29 }
 0x160   :  { %117 = vadd.xlane.f32.xlu1 %v116_v30 }
 0x1e9   :  { %v115_v34 = vpop.xlane.xlu1 %114 }
 0x1ea   :  { %v119_v36 = vadd.f32 %v115_v34, %v112_v33 }
 0x1ed   :  { %v118_v35 = vpop.xlane.xlu1 %117 }
 0x1ee   :  { %v120_v37 = vmul.f32 2.0, %v118_v35 }
 0x1f0   :  { %v121_v39 = vsub.f32 %v119_v36, %v120_v37 }
 0x1f2   :  { %v143_v40 = vmul.f32 %v204_v38, %v121_v39 }
 0x1f4   :  { %v144_v41 = vmax.f32 %v143_v40, 1e-12 }
 0x1f6   :  { %v145_v42 = vmin.f32 %v144_v41, 1e+12 }
 0x1f8   :  { %v154_v43 = vsel %vm153_vm4, %v145_v42, 0.0 }
 0x1f9   :  { %155 = vadd.xlane.f32.xlu1 %v154_v43 }
 0x286   :  { %v156_v44 = vpop.xlane.xlu1 %155 }
 0x287   :  { %v157_v45 = vrot.slane %v156_v44, 4 }
 0x289   :  { %v158_v46 = vadd.f32 %v157_v45, %v156_v44 }
 0x28b   :  { %v159_v47 = vrot.slane %v158_v46, 2 }
 0x28d   :  { %v160_v48 = vadd.f32 %v159_v47, %v158_v46 }
 0x28f   :  { %v161_v49 = vrot.slane %v160_v48, 1 }
 0x291   :  { %v162_v50 = vadd.f32 %v161_v49, %v160_v48 }
 0x293   :  { %196 = vpush %v162_v50 }
 0x2c4   :  { %s197_s1 = spop %196 }
 0x2c5   :  { %s169_s2 = sadd.f32 4.8e-11, %s197_s1 }
 0x2c7   :  { %s170_s17 = smul.f32 0.125, %s169_s2 }
 0x2c9   :  { %172 = sst [smem:[#allocation3]] %s170_s17 }
 0x2ca   :  { %214 = shalt.err (!%p211_p2)
}
 0x2cb   :  { %s220_s25 = smov [#allocation3]  }
 0x2cc   :  { %180 = dma.smem_to_hbm %s220_s25, 16, %s268_s3, [#allocation4]  }
 0x2cd   :  { %215 = dma.done.wait [#allocation4], 16  }
 0x2ce   :  { %216 = vsyncadd [#allocation4], 4294967280 }
 0x2cf   :  { %184 = sfence }
 0x2d0   :  { %185 = vsyncpa [#allocation4], 1 }

</bundles_post_ra>
